<compile_context>
chip_gen: v7x
topology: tpu7x:2x2x1
jax: 0.10.0
libtpu: 0.0.40
codegen_flags: <defaults>
</compile_context>

<pallas_src>
import jax
import jax.numpy as jnp
from jax.experimental import pallas as pl
from jax.experimental.pallas import tpu as pltpu

# Feature dims implied by MLP(in_features=2048): each branch contributes 1024.
D_DEPTH = 1024
D_POINT = 1024
D_IN = D_DEPTH + D_POINT        # 2048
D_OUT = 128                     # MLP layers=[128], classify=True


def fusion_mlp_kernel(xd_ref, xp_ref, wd_ref, wp_ref, b_ref, o_ref):
    """out = concat([x_depth, x_ptcloud], 1) @ W + b, via split-weight matmuls.

    xd_ref: (TB, D_DEPTH)    f32 depth-branch features (batch tile)
    xp_ref: (TB, D_POINT)    f32 point-branch features (batch tile)
    wd_ref: (D_DEPTH, D_OUT) bf16 top half of the Linear weight (rows 0:1024)
    wp_ref: (D_POINT, D_OUT) bf16 bottom half of the Linear weight (rows 1024:2048)
    b_ref : (1, D_OUT)       f32 bias (lane-aligned broadcast)
    o_ref : (TB, D_OUT)      output logits
    """
    # In-kernel bf16 cast (hides under the activation DMA; no extra HBM pass).
    xd = xd_ref[...].astype(jnp.bfloat16)
    xp = xp_ref[...].astype(jnp.bfloat16)
    acc = jnp.dot(xd, wd_ref[...], preferred_element_type=jnp.float32)
    acc = acc + jnp.dot(xp, wp_ref[...], preferred_element_type=jnp.float32)
    o_ref[...] = (acc + b_ref[...]).astype(o_ref.dtype)


def _round_up(x, m):
    return (x + m - 1) // m * m


def prepare_fusion_params(w, b):
    """One-time parameter prep (hoisted out of the per-inference hot path).

    Splits the (2048, 128) Linear weight into the depth / point halves and casts
    to bf16; reshapes the bias to a lane-aligned (1, 128) f32 row.
    """
    assert w.shape == (D_IN, D_OUT)
    assert b.shape == (D_OUT,)
    w_d = w[:D_DEPTH, :].astype(jnp.bfloat16)
    w_p = w[D_DEPTH:, :].astype(jnp.bfloat16)
    b2d = b.reshape(1, D_OUT).astype(jnp.float32)
    return w_d, w_p, b2d


def _choose_tb(batch):
    """Batch tile: full-array block for tiny batches (no padding, no slicing);
    otherwise >=2 grid steps (v7x megacore) and <=512 rows per step."""
    if batch < 32:
        return batch
    return min(512, _round_up(pl.cdiv(batch, 2), 16))


def _vmem_limit_bytes(tb):
    act = 2 * (2 * tb * D_DEPTH * 4)          # two f32 activation inputs, double-buffered
    wgt = 2 * (D_DEPTH + D_POINT) * D_OUT * 2  # bf16 weight halves (double-buffered)
    out = 2 * tb * D_OUT * 4                   # f32 output tile, double-buffered
    return max(act + wgt + out + (2 << 20), 4 << 20)


def point_depth_feature_fusion(x_depth_feat, x_ptcloud_feat, params,
                               out_dtype=jnp.float32):
    """Fused concat (depth first, matching torch.cat((x_depth, x_ptcloud), 1))
    + Linear(2048, 128) in one Pallas kernel, gridded over the batch.

    `params` must come from `prepare_fusion_params` (weights pre-split/pre-cast
    outside the hot path).
    """
    w_d, w_p, b2d = params
    B = x_ptcloud_feat.shape[0]
    assert x_depth_feat.shape == (B, D_DEPTH)
    assert x_ptcloud_feat.shape == (B, D_POINT)
    assert w_d.shape == (D_DEPTH, D_OUT) and w_p.shape == (D_POINT, D_OUT)

    TB = _choose_tb(B)
    grid = (pl.cdiv(B, TB),)

    out = pl.pallas_call(
        fusion_mlp_kernel,
        out_shape=jax.ShapeDtypeStruct((B, D_OUT), out_dtype),
        grid_spec=pltpu.PrefetchScalarGridSpec(
            num_scalar_prefetch=0,
            grid=grid,
            in_specs=[
                pl.BlockSpec((TB, D_DEPTH), lambda i: (i, 0)),
                pl.BlockSpec((TB, D_POINT), lambda i: (i, 0)),
                # Weight/bias blocks are grid-invariant -> stay VMEM-resident.
                pl.BlockSpec((D_DEPTH, D_OUT), lambda i: (0, 0)),
                pl.BlockSpec((D_POINT, D_OUT), lambda i: (0, 0)),
                pl.BlockSpec((1, D_OUT), lambda i: (0, 0)),
            ],
            out_specs=pl.BlockSpec((TB, D_OUT), lambda i: (i, 0)),
        ),
        compiler_params=pltpu.CompilerParams(
            dimension_semantics=("parallel",),        # batch tiles shard on v7x's 2 TCs
            vmem_limit_bytes=_vmem_limit_bytes(TB),   # honest, TB-scaled budget
        ),
    )(x_depth_feat, x_ptcloud_feat, w_d, w_p, b2d)

    return out


def reference_f32(x_depth_feat, x_ptcloud_feat, w, b):
    """Plain-JAX f32 reference of the fusion head (eval-mode dropout = identity)."""
    out = jnp.concatenate((x_depth_feat, x_ptcloud_feat), axis=1)
    out = out.reshape(out.shape[0], -1)
    return out @ w + b


def reference_matched(x_depth_feat, x_ptcloud_feat, w, b):
    """Reference on the same bf16-quantized operands (isolates kernel math
    from the deliberate bf16 weight/activation quantization)."""
    xd = x_depth_feat.astype(jnp.bfloat16).astype(jnp.float32)
    xp = x_ptcloud_feat.astype(jnp.bfloat16).astype(jnp.float32)
    wq = w.astype(jnp.bfloat16).astype(jnp.float32)
    out = jnp.concatenate((xd, xp), axis=1)
    return jnp.dot(out, wq, precision=jax.lax.Precision.HIGHEST) + b


if __name__ == "__main__":
    key = jax.random.PRNGKey(0)
    k_xd, k_xp, k_w, k_b = jax.random.split(key, 4)

    batch = 2
    # Backbone feature outputs (stand-ins for Motion / DepthCRNN outputs).
    x_depth_feat = jax.random.normal(k_xd, (batch, D_DEPTH), dtype=jnp.float32)
    x_ptcloud_feat = jax.random.normal(k_xp, (batch, D_POINT), dtype=jnp.float32)

    # Deterministic MLP parameters: Linear(2048 -> 128), stored as (in, out).
    w = jax.random.normal(k_w, (D_IN, D_OUT), dtype=jnp.float32) * 0.02
    b = jax.random.normal(k_b, (D_OUT,), dtype=jnp.float32) * 0.01

    # One-time weight prep, outside the per-inference hot path.
    params = jax.block_until_ready(prepare_fusion_params(w, b))

    out = point_depth_feature_fusion(x_depth_feat, x_ptcloud_feat, params)
    out = jax.block_until_ready(out)
    assert out.shape == (batch, D_OUT)

    # Tight check vs a reference computed on the same bf16-quantized operands.
    ref_m = reference_matched(x_depth_feat, x_ptcloud_feat, w, b)
    assert jnp.allclose(out, ref_m, atol=1e-3, rtol=1e-3), "mismatch vs matched ref"

    # Loose check vs the full-precision f32 module semantics (bf16 quantization
    # error only).
    ref_f32 = reference_f32(x_depth_feat, x_ptcloud_feat, w, b)
    assert jnp.allclose(out, ref_f32, atol=5e-2, rtol=5e-2), "mismatch vs f32 ref"

    print("KERNEL_OK")
</pallas_src>

<mosaic_0001>
module attributes {stable_mosaic.version = 11 : i64} {
  func.func @fusion_mlp_kernel(%arg0: i32, %arg1: memref<2x1024xf32, #tpu.memory_space<vmem>>, %arg2: memref<2x1024xf32, #tpu.memory_space<vmem>>, %arg3: memref<1024x128xbf16, #tpu.memory_space<vmem>>, %arg4: memref<1024x128xbf16, #tpu.memory_space<vmem>>, %arg5: memref<1x128xf32, #tpu.memory_space<vmem>>, %arg6: memref<2x128xf32, #tpu.memory_space<vmem>>) attributes {dimension_semantics = [#tpu.dimension_semantics<parallel>], iteration_bounds = array<i64: 1>, scalar_prefetch = 0 : i64, scratch_operands = 0 : i64, tpu.core_type = #tpu.core_type<tc>, window_params = [{transform_indices = @transform_0, window_bounds = array<i64: 2, 1024>}, {transform_indices = @transform_1, window_bounds = array<i64: 2, 1024>}, {pipeline_mode = #tpu.pipeline_mode<synchronous>, transform_indices = @transform_2, window_bounds = array<i64: 1024, 128>}, {pipeline_mode = #tpu.pipeline_mode<synchronous>, transform_indices = @transform_3, window_bounds = array<i64: 1024, 128>}, {pipeline_mode = #tpu.pipeline_mode<synchronous>, transform_indices = @transform_4, window_bounds = array<i64: 1, 128>}, {transform_indices = @transform_5, window_bounds = array<i64: 2, 128>}]} {
    %c0 = arith.constant 0 : index
    %c0_0 = arith.constant 0 : index
    %0 = vector.load %arg1[%c0, %c0_0] : memref<2x1024xf32, #tpu.memory_space<vmem>>, vector<2x1024xf32>
    %1 = arith.truncf %0 : vector<2x1024xf32> to vector<2x1024xbf16>
    %c0_1 = arith.constant 0 : index
    %c0_2 = arith.constant 0 : index
    %2 = vector.load %arg2[%c0_1, %c0_2] : memref<2x1024xf32, #tpu.memory_space<vmem>>, vector<2x1024xf32>
    %3 = arith.truncf %2 : vector<2x1024xf32> to vector<2x1024xbf16>
    %c0_3 = arith.constant 0 : index
    %c0_4 = arith.constant 0 : index
    %4 = vector.load %arg3[%c0_3, %c0_4] : memref<1024x128xbf16, #tpu.memory_space<vmem>>, vector<1024x128xbf16>
    %cst = arith.constant dense<0.000000e+00> : vector<2x128xf32>
    %5 = tpu.matmul %1, %4, %cst {dimension_numbers = #tpu.dot_dimension_numbers<[1], [0], [0], [1], [0, 0, 1, 1], [], []>} : vector<2x1024xbf16>, vector<1024x128xbf16>, vector<2x128xf32> -> vector<2x128xf32>
    %c0_5 = arith.constant 0 : index
    %c0_6 = arith.constant 0 : index
    %6 = vector.load %arg4[%c0_5, %c0_6] : memref<1024x128xbf16, #tpu.memory_space<vmem>>, vector<1024x128xbf16>
    %cst_7 = arith.constant dense<0.000000e+00> : vector<2x128xf32>
    %7 = tpu.matmul %3, %6, %cst_7 {dimension_numbers = #tpu.dot_dimension_numbers<[1], [0], [0], [1], [0, 0, 1, 1], [], []>} : vector<2x1024xbf16>, vector<1024x128xbf16>, vector<2x128xf32> -> vector<2x128xf32>
    %8 = arith.addf %5, %7 : vector<2x128xf32>
    %c0_8 = arith.constant 0 : index
    %c0_9 = arith.constant 0 : index
    %9 = vector.load %arg5[%c0_8, %c0_9] : memref<1x128xf32, #tpu.memory_space<vmem>>, vector<1x128xf32>
    %10 = vector.broadcast %9 : vector<1x128xf32> to vector<2x128xf32>
    %11 = arith.addf %8, %10 : vector<2x128xf32>
    %c0_10 = arith.constant 0 : index
    %c0_11 = arith.constant 0 : index
    %12 = vector.load %arg6[%c0_10, %c0_11] : memref<2x128xf32, #tpu.memory_space<vmem>>, vector<2x128xf32>
    tpu.vector_store %arg6[%c0_10, %c0_11], %11 {strides = array<i32>} : memref<2x128xf32, #tpu.memory_space<vmem>>, vector<2x128xf32>,
    return
  }
  func.func @transform_0(%arg0: i32) -> (i32, i32) {
    %c0_i32 = arith.constant 0 : i32
    %c0_i32_0 = arith.constant 0 : i32
    return %arg0, %c0_i32 : i32, i32
  }
  func.func @transform_1(%arg0: i32) -> (i32, i32) {
    %c0_i32 = arith.constant 0 : i32
    %c0_i32_0 = arith.constant 0 : i32
    return %arg0, %c0_i32 : i32, i32
  }
  func.func @transform_2(%arg0: i32) -> (i32, i32) {
    %c0_i32 = arith.constant 0 : i32
    %c0_i32_0 = arith.constant 0 : i32
    %c0_i32_1 = arith.constant 0 : i32
    return %c0_i32, %c0_i32_0 : i32, i32
  }
  func.func @transform_3(%arg0: i32) -> (i32, i32) {
    %c0_i32 = arith.constant 0 : i32
    %c0_i32_0 = arith.constant 0 : i32
    %c0_i32_1 = arith.constant 0 : i32
    return %c0_i32, %c0_i32_0 : i32, i32
  }
  func.func @transform_4(%arg0: i32) -> (i32, i32) {
    %c0_i32 = arith.constant 0 : i32
    %c0_i32_0 = arith.constant 0 : i32
    %c0_i32_1 = arith.constant 0 : i32
    return %c0_i32, %c0_i32_0 : i32, i32
  }
  func.func @transform_5(%arg0: i32) -> (i32, i32) {
    %c0_i32 = arith.constant 0 : i32
    %c0_i32_0 = arith.constant 0 : i32
    return %arg0, %c0_i32 : i32, i32
  }
}

</mosaic_0001>

<bundles_post_ra>
// kernel: tpu_custom_call.1
= control target key start
LH: loop header
LB: loop body
LE: loop exit
PB: predicated region body
PF: predicated region fallthrough
CT: control target
= control target key end

     0   :  { %10 = vsyncpa [#allocation3], 0  ;;  %s2225_s0 = inlined_call_operand.hbm [shape: f32[2,1024], index: 0, kind: input, shape index: {}]   ;;  %s2226_s1 = inlined_call_operand.hbm [shape: f32[2,1024], index: 1, kind: input, shape index: {}]   ;;  %s2227_s2 = inlined_call_operand.hbm [shape: bf16[1024,128], index: 2, kind: input, shape index: {}]   ;;  %s2228_s3 = inlined_call_operand.hbm [shape: bf16[1024,128], index: 3, kind: input, shape index: {}]   ;;  %s2229_s4 = inlined_call_operand.vmem [shape: f32[1,128], index: 4, kind: input, shape index: {}]   ;;  %s2230_s5 = inlined_call_operand.hbm [shape: f32[2,128], index: 5, kind: output, shape index: {}]  }
   0x1   :  { %11 = vsyncpa [#allocation6], 0 }
   0x2   :  { %12 = vsyncpa [#allocation9], 0 }
   0x3   :  { %13 = vsyncpa [#allocation4], 0  ;;  %s2114_s18 = smov [#allocation5]   ;;  %s2115_s20 = smov [#allocation2]  }
   0x4   :  { %s30_s19 = sshll.u32 %s2114_s18, 4  ;;  %s20_s21 = sshll.u32 %s2115_s20, 4  ;;  %s31_s19 = int_to_ptr.vmem [resolvable:$true] %s30_s19  ;;  %s21_s21 = int_to_ptr.vmem [resolvable:$true] %s20_s21 }
   0x5   :  { %s1996_s24 = scalar_lea.hbm %s2226_s1, 256 }
   0x6   :  { %p1997_p0 = scmp.ne.s32.totalorder %s2226_s1, %s1996_s24  ;;  %p2000_p1 = scmp.lt.u32.totalorder %s1996_s24, %s2226_s1 }
   0x8   :  { %p2002_p2 = pnand %p2000_p1, %p1997_p0 }
   0xa   :  { %2005 = shalt.err (!%p2002_p2)
}
   0xb   :  { %s2006_s29 = scalar_lea.vmem %s31_s19, 256  ;;  %p2011_p4 = scmp.lt.s32.totalorder %s31_s19, %s31_s19 }
   0xc   :  { %p2007_p3 = scmp.ne.s32.totalorder %s31_s19, %s2006_s29  ;;  %p2012_p5 = scmp.lt.s32.totalorder %s2006_s29, %s2006_s29 }
   0xe   :  { %p2013_p6 = por %p2012_p5, %p2011_p4 }
  0x10   :  { %p2014_p7 = pnand %p2013_p6, %p2007_p3 }
  0x12   :  { %2017 = shalt.err (!%p2014_p7)
}
  0x13   :  { %33 = dma.hbm_to_vmem [thread:$0]  %s2226_s1, 256, %s31_s19, [#allocation6]  }
  0x14   :  { %s2018_s9 = scalar_lea.hbm %s2225_s0, 256 }
  0x15   :  { %p2019_p8 = scmp.ne.s32.totalorder %s2225_s0, %s2018_s9  ;;  %p2022_p9 = scmp.lt.u32.totalorder %s2018_s9, %s2225_s0 }
  0x17   :  { %p2024_p10 = pnand %p2022_p9, %p2019_p8 }
  0x19   :  { %2027 = shalt.err (!%p2024_p10)
}
  0x1a   :  { %s2028_s14 = scalar_lea.vmem %s21_s21, 256  ;;  %p2033_p12 = scmp.lt.s32.totalorder %s21_s21, %s21_s21 }
  0x1b   :  { %p2029_p11 = scmp.ne.s32.totalorder %s21_s21, %s2028_s14  ;;  %p2034_p13 = scmp.lt.s32.totalorder %s2028_s14, %s2028_s14 }
  0x1d   :  { %p2035_p0 = por %p2034_p13, %p2033_p12 }
  0x1f   :  { %p2036_p1 = pnand %p2035_p0, %p2029_p11 }
  0x21   :  { %2039 = shalt.err (!%p2036_p1)
}
  0x22   :  { %23 = dma.hbm_to_vmem [thread:$0]  %s2225_s0, 256, %s21_s21, [#allocation3]  }
  0x23   :  { %s2116_s16 = smov [#allocation7]   ;;  %s2040_s20 = scalar_lea.hbm %s2227_s2, 8192 }
  0x24   :  { %s39_s17 = sshll.u32 %s2116_s16, 4  ;;  %p2041_p2 = scmp.ne.s32.totalorder %s2227_s2, %s2040_s20  ;;  %s40_s17 = int_to_ptr.vmem [resolvable:$true] %s39_s17 }
  0x25   :  { %p2044_p3 = scmp.lt.u32.totalorder %s2040_s20, %s2227_s2 }
  0x27   :  { %p2046_p4 = pnand %p2044_p3, %p2041_p2 }
  0x29   :  { %2049 = shalt.err (!%p2046_p4)
}
  0x2a   :  { %s2050_s26 = scalar_lea.vmem %s40_s17, 8192  ;;  %p2055_p6 = scmp.lt.s32.totalorder %s40_s17, %s40_s17 }
  0x2b   :  { %p2051_p5 = scmp.ne.s32.totalorder %s40_s17, %s2050_s26  ;;  %p2056_p7 = scmp.lt.s32.totalorder %s2050_s26, %s2050_s26 }
  0x2d   :  { %p2057_p8 = por %p2056_p7, %p2055_p6 }
  0x2f   :  { %p2058_p9 = pnand %p2057_p8, %p2051_p5 }
  0x31   :  { %2061 = shalt.err (!%p2058_p9)
}
  0x32   :  { %s2117_s0 = smov 64   ;;  %s2118_s21 = smov 4  }
  0x33   :  { %45 = dma.hbm_to_vmem [thread:$0]  %s2227_s2, 8192, %s40_s17, [#allocation6], %s2117_s0, %s2117_s0, %s2118_s21  }
  0x34   :  { %s2119_s29 = smov [#allocation8]   ;;  %s2062_s8 = scalar_lea.hbm %s2228_s3, 8192 }
  0x35   :  { %s51_s30 = sshll.u32 %s2119_s29, 4  ;;  %p2063_p10 = scmp.ne.s32.totalorder %s2228_s3, %s2062_s8  ;;  %s52_s30 = int_to_ptr.vmem [resolvable:$true] %s51_s30 }
  0x36   :  { %p2066_p11 = scmp.lt.u32.totalorder %s2062_s8, %s2228_s3 }
  0x38   :  { %p2068_p12 = pnand %p2066_p11, %p2063_p10 }
  0x3a   :  { %2071 = shalt.err (!%p2068_p12)
}
  0x3b   :  { %s2072_s13 = scalar_lea.vmem %s52_s30, 8192  ;;  %p2077_p0 = scmp.lt.s32.totalorder %s52_s30, %s52_s30 }
  0x3c   :  { %p2073_p13 = scmp.ne.s32.totalorder %s52_s30, %s2072_s13  ;;  %p2078_p1 = scmp.lt.s32.totalorder %s2072_s13, %s2072_s13 }
  0x3e   :  { %p2079_p2 = por %p2078_p1, %p2077_p0 }
  0x40   :  { %p2080_p3 = pnand %p2079_p2, %p2073_p13 }
  0x42   :  { %2083 = shalt.err (!%p2080_p3)
}
  0x43   :  { %57 = dma.hbm_to_vmem [thread:$0]  %s2228_s3, 8192, %s52_s30, [#allocation9], %s2117_s0, %s2117_s0, %s2118_s21  }
  0x44   :  { %2106 = dma.done.wait [#allocation3], 256  }
  0x45   :  { %2107 = vsyncadd [#allocation3], 4294967040 }
  0x46   :  { %2108 = dma.done.wait [#allocation6], 8448  }
  0x47   :  { %2109 = vsyncadd [#allocation6], 4294958848 }
  0x48   :  { %2110 = dma.done.wait [#allocation9], 8192  }
  0x49   :  { %2111 = vsyncadd [#allocation9], 4294959104  ;;  %v1864_v0 = vld [vmem:[#allocation8 + $0x40] sm:$0xff]   ;;  %v1868_v4 = vld [vmem:[#allocation8 + $0x48] sm:$0xff]   ;;  %v2120_v22 = vmov 1983009808   ;;  %v81_v24 = vlaneseq }
  0x4a   :  { %v1865_v1 = vld [vmem:[#allocation8 + $0xc0] sm:$0xff]   ;;  %1680 = vmatprep.subr.bf16.mxu0 %v1864_v0  ;;  %v1869_v5 = vld [vmem:[#allocation8 + $0xc8] sm:$0xff]   ;;  %v1872_v8 = vld [vmem:[#allocation8 + $0x50] sm:$0xff]   ;;  %v79_v23 = vunpack.c.l.s4 %v2120_v22  ;;  %s2121_s15 = smov [#allocation10]  }
  0x4b   :  { %v1866_v2 = vld [vmem:[#allocation8] sm:$0xff]   ;;  %1702 = vmatprep.subr.bf16.mxu1 %v1865_v1  ;;  %v1870_v6 = vld [vmem:[#allocation8 + $0x8] sm:$0xff]   ;;  %v1873_v9 = vld [vmem:[#allocation8 + $0xd0] sm:$0xff]   ;;  %v82_v30 = vshrl.u32 %v81_v24, 7  ;;  %s1540_s16 = sshll.u32 %s2121_s15, 4  ;;  %s1541_s16 = int_to_ptr.vmem [resolvable:$true] %s1540_s16 }
  0x4c   :  { %v1867_v3 = vld [vmem:[#allocation8 + $0x80] sm:$0xff]   ;;  %1681 = vmatpush3.bf16.msra.mxu0 %v1866_v2  ;;  %v1871_v7 = vld [vmem:[#allocation8 + $0x88] sm:$0xff]   ;;  %v1874_v10 = vld [vmem:[#allocation8 + $0x10] sm:$0xff]   ;;  %v80_v29 = vunpack.c.0.s8 %v79_v23  ;;  %s2084_s17 = scalar_lea.vmem %s1541_s16, 32  ;;  %p2089_p5 = scmp.lt.s32.totalorder %s1541_s16, %s1541_s16 }
  0x4d   :  { %1703 = vmatpush3.bf16.msra.mxu1 %v1867_v3  ;;  %1682 = vmatprep.subr.bf16.mxu0 %v1868_v4  ;;  %v1875_v11 = vld [vmem:[#allocation8 + $0x90] sm:$0xff]   ;;  %v1876_v12 = vld [vmem:[#allocation8 + $0x58] sm:$0xff]   ;;  %v1880_v16 = vld [vmem:[#allocation8 + $0x60] sm:$0xff]   ;;  %p2085_p4 = scmp.ne.s32.totalorder %s1541_s16, %s2084_s17  ;;  %p2090_p6 = scmp.lt.s32.totalorder %s2084_s17, %s2084_s17 }
  0x4e   :  { %1704 = vmatprep.subr.bf16.mxu1 %v1869_v5  ;;  %v1877_v13 = vld [vmem:[#allocation8 + $0xd8] sm:$0xff]   ;;  %v1881_v17 = vld [vmem:[#allocation8 + $0xe0] sm:$0xff]   ;;  %v1884_v20 = vld [vmem:[#allocation8 + $0x68] sm:$0xff]   ;;  %v2200_v35 = vsub.s32 %v80_v29, %v82_v30 }
  0x4f   :  { %v1878_v14 = vld [vmem:[#allocation8 + $0x18] sm:$0xff]   ;;  %v1882_v18 = vld [vmem:[#allocation8 + $0x20] sm:$0xff]   ;;  %v1885_v21 = vld [vmem:[#allocation8 + $0xe8] sm:$0xff]   ;;  %p2091_p7 = por %p2090_p6, %p2089_p5 }
  0x50   :  { %1683 = vmatpush3.bf16.msra.mxu0 %v1870_v6  ;;  %v1879_v15 = vld [vmem:[#allocation8 + $0x98] sm:$0xff]   ;;  %v1883_v19 = vld [vmem:[#allocation8 + $0xa0] sm:$0xff]   ;;  %v1886_v25 = vld [vmem:[#allocation8 + $0x28] sm:$0xff]  }
  0x51   :  { %1705 = vmatpush3.bf16.msra.mxu1 %v1871_v7  ;;  %1684 = vmatprep.subr.bf16.mxu0 %v1872_v8  ;;  %v1887_v26 = vld [vmem:[#allocation8 + $0xa8] sm:$0xff]   ;;  %v1888_v27 = vld [vmem:[#allocation8 + $0x70] sm:$0xff]   ;;  %v1892_v33 = vld [vmem:[#allocation8 + $0x78] sm:$0xff]   ;;  %p2092_p8 = pnand %p2091_p7, %p2085_p4 }
  0x52   :  { %1706 = vmatprep.subr.bf16.mxu1 %v1873_v9  ;;  %v1889_v28 = vld [vmem:[#allocation8 + $0xf0] sm:$0xff]   ;;  %v1893_v34 = vld [vmem:[#allocation8 + $0xf8] sm:$0xff]   ;;  %v1897_v41 = vld [vmem:[#allocation8 + $0x140] sm:$0xff]  }
  0x53   :  { %v1890_v31 = vld [vmem:[#allocation8 + $0x30] sm:$0xff]   ;;  %v1894_v36 = vld [vmem:[#allocation8 + $0x38] sm:$0xff]   ;;  %v1898_v42 = vld [vmem:[#allocation8 + $0x1c0] sm:$0xff]  }
  0x54   :  { %1685 = vmatpush3.bf16.msra.mxu0 %v1874_v10  ;;  %v1891_v32 = vld [vmem:[#allocation8 + $0xb0] sm:$0xff]   ;;  %v1895_v37 = vld [vmem:[#allocation8 + $0xb8] sm:$0xff]   ;;  %v1899_v48 = vld [vmem:[#allocation8 + $0x100] sm:$0xff]  }
  0x55   :  { %1707 = vmatpush3.bf16.msra.mxu1 %v1875_v11  ;;  %1686 = vmatprep.subr.bf16.mxu0 %v1876_v12  ;;  %v127_v38 = vld [vmem:[#allocation5] sm:$0xff]  ;;  %v1901_v50 = vld [vmem:[#allocation8 + $0x148] sm:$0xff]   ;;  %v1900_v52 = vld [vmem:[#allocation8 + $0x180] sm:$0xff]  }
  0x56   :  { %1708 = vmatprep.subr.bf16.mxu1 %v1877_v13  ;;  %v138_v39 = vrot.slane %v127_v38, %v2200_v35  ;;  %v131_v40 = vcombine.high %v127_v38, %v127_v38  ;;  %v1902_v53 = vld [vmem:[#allocation8 + $0x1c8] sm:$0xff]   ;;  %v1905_v55 = vld [vmem:[#allocation8 + $0x150] sm:$0xff]   ;;  %v1909_v59 = vld [vmem:[#allocation8 + $0x158] sm:$0xff]  }
  0x57   :  { %v1903_v54 = vld [vmem:[#allocation8 + $0x108] sm:$0xff]   ;;  %v1906_v57 = vld [vmem:[#allocation8 + $0x1d0] sm:$0xff]   ;;  %v1910_v61 = vld [vmem:[#allocation8 + $0x1d8] sm:$0xff]  }
  0x58   :  { %1687 = vmatpush3.bf16.msra.mxu0 %v1878_v14  ;;  %v146_v43 = vcombine.high %v138_v39, %v138_v39  ;;  %v145_v44 = vrot.slane %v131_v40, %v2200_v35  ;;  %v173_v45 = vpack.c.bf16 %v138_v39, %v138_v39  ;;  %v1904_v56 = vld [vmem:[#allocation8 + $0x188] sm:$0xff]   ;;  %v1907_v58 = vld [vmem:[#allocation8 + $0x110] sm:$0xff]   ;;  %v1911_v62 = vld [vmem:[#allocation8 + $0x118] sm:$0xff]  }
  0x59   :  { %1709 = vmatpush3.bf16.msra.mxu1 %v1879_v15  ;;  %1688 = vmatprep.subr.bf16.mxu0 %v1880_v16  ;;  %v1908_v60 = vld [vmem:[#allocation8 + $0x190] sm:$0xff]   ;;  %v1913_v63 = vld [vmem:[#allocation8 + $0x160] sm:$0xff]   ;;  %v1912_v0 = vld [vmem:[#allocation8 + $0x198] sm:$0xff]  }
  0x5a   :  { %1710 = vmatprep.subr.bf16.mxu1 %v1881_v17  ;;  %v174_v46 = vpack.c.bf16 %v146_v43, %v146_v43  ;;  %v147_v47 = vcombine.high %v145_v44, %v145_v44  ;;  %v175_v49 = vpack.c.bf16 %v145_v44, %v145_v44  ;;  %v1914_v1 = vld [vmem:[#allocation8 + $0x1e0] sm:$0xff]   ;;  %v1917_v3 = vld [vmem:[#allocation8 + $0x168] sm:$0xff]   ;;  %v1921_v7 = vld [vmem:[#allocation8 + $0x170] sm:$0xff]  }
  0x5b   :  { %v1915_v2 = vld [vmem:[#allocation8 + $0x120] sm:$0xff]   ;;  %v1918_v5 = vld [vmem:[#allocation8 + $0x1e8] sm:$0xff]   ;;  %v1922_v9 = vld [vmem:[#allocation8 + $0x1f0] sm:$0xff]  }
  0x5c   :  { %1689 = vmatpush3.bf16.msra.mxu0 %v1882_v18  ;;  %853 = vmatprep.mubr.bf16.mxu0 %v174_v46  ;;  %v176_v51 = vpack.c.bf16 %v147_v47, %v147_v47  ;;  %v1916_v4 = vld [vmem:[#allocation8 + $0x1a0] sm:$0xff]   ;;  %v1919_v6 = vld [vmem:[#allocation8 + $0x128] sm:$0xff]   ;;  %v1923_v10 = vld [vmem:[#allocation8 + $0x130] sm:$0xff]  }
  0x5d   :  { %1711 = vmatpush3.bf16.msra.mxu1 %v1883_v19  ;;  %1690 = vmatprep.subr.bf16.mxu0 %v1884_v20  ;;  %v1920_v8 = vld [vmem:[#allocation8 + $0x1a8] sm:$0xff]   ;;  %v1925_v11 = vld [vmem:[#allocation8 + $0x178] sm:$0xff]   ;;  %v1924_v12 = vld [vmem:[#allocation8 + $0x1b0] sm:$0xff]  }
  0x5e   :  { %1712 = vmatprep.subr.bf16.mxu1 %v1885_v21  ;;  %893 = vmatprep.mubr.bf16.mxu1 %v176_v51  ;;  %v1926_v13 = vld [vmem:[#allocation8 + $0x1f8] sm:$0xff]   ;;  %v1930_v18 = vld [vmem:[#allocation7 + $0x40] sm:$0xff]   ;;  %v1941_v39 = vld [vmem:[#allocation7 + $0x90] sm:$0xff]  }
  0x5f   :  { %v128_v14 = vld [vmem:[#allocation5 + $0x8] sm:$0xff]  ;;  %v1931_v23 = vld [vmem:[#allocation7 + $0xc0] sm:$0xff]   ;;  %v1950_v46 = vld [vmem:[#allocation7 + $0x68] sm:$0xff]  }
  0x60   :  { %1691 = vmatpush3.bf16.msra.mxu0 %v1886_v25  ;;  %v1927_v15 = vld [vmem:[#allocation8 + $0x138] sm:$0xff]   ;;  %v155_v16 = vrot.slane %v128_v14, %v2200_v35  ;;  %v148_v17 = vcombine.high %v128_v14, %v128_v14  ;;  %v1933_v30 = vld [vmem:[#allocation7 + $0x80] sm:$0xff]   ;;  %v1953_v51 = vld [vmem:[#allocation7 + $0xa8] sm:$0xff]  }
  0x61   :  { %1713 = vmatpush3.bf16.msra.mxu1 %v1887_v26  ;;  %1692 = vmatprep.subr.bf16.mxu0 %v1888_v27  ;;  %v1928_v19 = vld [vmem:[#allocation8 + $0x1b8] sm:$0xff]   ;;  %v1932_v26 = vld [vmem:[#allocation7] sm:$0xff]   ;;  %v1972_v14 = vld [vmem:[#allocation7 + $0x1d0] sm:$0xff]  }
  0x62   :  { %1714 = vmatprep.subr.bf16.mxu1 %v1889_v28  ;;  %v163_v20 = vcombine.high %v155_v16, %v155_v16  ;;  %v162_v21 = vrot.slane %v148_v17, %v2200_v35  ;;  %v177_v22 = vpack.c.bf16 %v155_v16, %v155_v16  ;;  %v1934_v28 = vld [vmem:[#allocation7 + $0x48] sm:$0xff]   ;;  %v1942_v38 = vld [vmem:[#allocation7 + $0x58] sm:$0xff]   ;;  %v1947_v44 = vld [vmem:[#allocation7 + $0xe0] sm:$0xff]  }
  0x63   :  { %v1943_v40 = vld [vmem:[#allocation7 + $0xd8] sm:$0xff]   ;;  %v1949_v47 = vld [vmem:[#allocation7 + $0xa0] sm:$0xff]   ;;  %v1974_v17 = vld [vmem:[#allocation7 + $0x190] sm:$0xff]  }
  0x64   :  { %1693 = vmatpush3.bf16.msra.mxu0 %v1890_v31  ;;  %v178_v24 = vpack.c.bf16 %v163_v20, %v163_v20  ;;  %v164_v25 = vcombine.high %v162_v21, %v162_v21  ;;  %v179_v27 = vpack.c.bf16 %v162_v21, %v162_v21  ;;  %v1935_v31 = vld [vmem:[#allocation7 + $0xc8] sm:$0xff]   ;;  %v1945_v43 = vld [vmem:[#allocation7 + $0x98] sm:$0xff]   ;;  %v1979_v20 = vld [vmem:[#allocation7 + $0x160] sm:$0xff]  }
  0x65   :  { %1715 = vmatpush3.bf16.msra.mxu1 %v1891_v32  ;;  %1694 = vmatprep.subr.bf16.mxu0 %v1892_v33  ;;  %v1936_v32 = vld [vmem:[#allocation7 + $0x8] sm:$0xff]   ;;  %v1938_v33 = vld [vmem:[#allocation7 + $0x50] sm:$0xff]   ;;  %v1975_v16 = vld [vmem:[#allocation7 + $0x158] sm:$0xff]  }
  0x66   :  { %1716 = vmatprep.subr.bf16.mxu1 %v1893_v34  ;;  %v180_v29 = vpack.c.bf16 %v164_v25, %v164_v25  ;;  %v1937_v34 = vld [vmem:[#allocation7 + $0x88] sm:$0xff]   ;;  %v1978_v21 = vld [vmem:[#allocation7 + $0x198] sm:$0xff]   ;;  %v1982_v25 = vld [vmem:[#allocation7 + $0x1a0] sm:$0xff]  }
  0x68   :  { %1695 = vmatpush3.bf16.msra.mxu0 %v1894_v36  ;;  %v1939_v36 = vld [vmem:[#allocation7 + $0xd0] sm:$0xff]  }
  0x69   :  { %1717 = vmatpush3.bf16.msra.mxu1 %v1895_v37  ;;  %1724 = vmatprep.subr.bf16.mxu0 %v1897_v41  ;;  %v1940_v37 = vld [vmem:[#allocation7 + $0x10] sm:$0xff]   ;;  %v1944_v41 = vld [vmem:[#allocation7 + $0x18] sm:$0xff]  }
  0x6a   :  { %1746 = vmatprep.subr.bf16.mxu1 %v1898_v42  ;;  %v1946_v42 = vld [vmem:[#allocation7 + $0x60] sm:$0xff]  }
  0x6b   :  { %854 = vmatmul.mubr.bf16.vlgmr.msra.gmra.mrb[0].mxu0 %v173_v45  ;;  %v1948_v45 = vld [vmem:[#allocation7 + $0x20] sm:$0xff]  }
  0x6c   :  { %1725 = vmatpush3.bf16.msra.mxu0 %v1899_v48  ;;  %894 = vmatmul.mubr.bf16.vlgmr.msra.gmra.mrb[0].mxu1 %v175_v49  ;;  %v1951_v48 = vld [vmem:[#allocation7 + $0xe8] sm:$0xff]  }
  0x6d   :  { %1726 = vmatprep.subr.bf16.mxu0 %v1901_v50  ;;  %1747 = vmatpush3.bf16.msra.mxu1 %v1900_v52  ;;  %v1952_v49 = vld [vmem:[#allocation7 + $0x28] sm:$0xff]   ;;  %v1954_v50 = vld [vmem:[#allocation7 + $0x70] sm:$0xff]  }
  0x6e   :  { %1748 = vmatprep.subr.bf16.mxu1 %v1902_v53  ;;  %933 = vmatprep.mubr.bf16.mxu0 %v178_v24  ;;  %v1955_v52 = vld [vmem:[#allocation7 + $0xf0] sm:$0xff]   ;;  %v1983_v24 = vld [vmem:[#allocation7 + $0x168] sm:$0xff]  }
  0x6f   :  { %973 = vmatprep.mubr.bf16.mxu1 %v180_v29  ;;  %v1956_v53 = vld [vmem:[#allocation7 + $0x30] sm:$0xff]   ;;  %v1986_v29 = vld [vmem:[#allocation7 + $0x1a8] sm:$0xff]  }
  0x70   :  { %1727 = vmatpush3.bf16.msra.mxu0 %v1903_v54  ;;  %v1958_v54 = vld [vmem:[#allocation7 + $0x78] sm:$0xff]  }
  0x71   :  { %1728 = vmatprep.subr.bf16.mxu0 %v1905_v55  ;;  %1749 = vmatpush3.bf16.msra.mxu1 %v1904_v56  ;;  %v1957_v55 = vld [vmem:[#allocation7 + $0xb0] sm:$0xff]   ;;  %v1959_v56 = vld [vmem:[#allocation7 + $0xf8] sm:$0xff]  }
  0x72   :  { %1750 = vmatprep.subr.bf16.mxu1 %v1906_v57  ;;  %v73_v57 = vld [vmem:[#allocation2] sm:$0xff] }
  0x74   :  { %1729 = vmatpush3.bf16.msra.mxu0 %v1907_v58  ;;  %v1960_v58 = vld [vmem:[#allocation7 + $0x38] sm:$0xff]  }
  0x75   :  { %1730 = vmatprep.subr.bf16.mxu0 %v1909_v59  ;;  %1751 = vmatpush3.bf16.msra.mxu1 %v1908_v60  ;;  %v84_v59 = vrot.slane %v73_v57, %v2200_v35  ;;  %v77_v60 = vcombine.high %v73_v57, %v73_v57 }
  0x76   :  { %1752 = vmatprep.subr.bf16.mxu1 %v1910_v61  ;;  %v1963_v61 = vld [vmem:[#allocation7 + $0x140] sm:$0xff]  }
  0x78   :  { %1731 = vmatpush3.bf16.msra.mxu0 %v1911_v62  ;;  %v1961_v62 = vld [vmem:[#allocation7 + $0xb8] sm:$0xff]  }
  0x79   :  { %1732 = vmatprep.subr.bf16.mxu0 %v1913_v63  ;;  %1753 = vmatpush3.bf16.msra.mxu1 %v1912_v0  ;;  %v92_v63 = vcombine.high %v84_v59, %v84_v59  ;;  %v91_v0 = vrot.slane %v77_v60, %v2200_v35 }
  0x7a   :  { %1754 = vmatprep.subr.bf16.mxu1 %v1914_v1  ;;  %v119_v1 = vpack.c.bf16 %v84_v59, %v84_v59 }
  0x7c   :  { %1733 = vmatpush3.bf16.msra.mxu0 %v1915_v2  ;;  %v1964_v2 = vld [vmem:[#allocation7 + $0x1c0] sm:$0xff]  }
  0x7d   :  { %1734 = vmatprep.subr.bf16.mxu0 %v1917_v3  ;;  %1755 = vmatpush3.bf16.msra.mxu1 %v1916_v4  ;;  %v120_v3 = vpack.c.bf16 %v92_v63, %v92_v63  ;;  %v93_v4 = vcombine.high %v91_v0, %v91_v0 }
  0x7e   :  { %1756 = vmatprep.subr.bf16.mxu1 %v1918_v5  ;;  %v1965_v5 = vld [vmem:[#allocation7 + $0x100] sm:$0xff]  }
  0x80   :  { %1735 = vmatpush3.bf16.msra.mxu0 %v1919_v6  ;;  %v121_v6 = vpack.c.bf16 %v91_v0, %v91_v0 }
  0x81   :  { %1736 = vmatprep.subr.bf16.mxu0 %v1921_v7  ;;  %1757 = vmatpush3.bf16.msra.mxu1 %v1920_v8  ;;  %v1967_v7 = vld [vmem:[#allocation7 + $0x148] sm:$0xff]   ;;  %v122_v8 = vpack.c.bf16 %v93_v4, %v93_v4 }
  0x82   :  { %1758 = vmatprep.subr.bf16.mxu1 %v1922_v9  ;;  %v1966_v9 = vld [vmem:[#allocation7 + $0x180] sm:$0xff]  }
  0x84   :  { %1737 = vmatpush3.bf16.msra.mxu0 %v1923_v10  ;;  %v1968_v10 = vld [vmem:[#allocation7 + $0x1c8] sm:$0xff]  }
  0x85   :  { %1738 = vmatprep.subr.bf16.mxu0 %v1925_v11  ;;  %1759 = vmatpush3.bf16.msra.mxu1 %v1924_v12  ;;  %v1969_v11 = vld [vmem:[#allocation7 + $0x108] sm:$0xff]   ;;  %v1971_v12 = vld [vmem:[#allocation7 + $0x150] sm:$0xff]  }
  0x86   :  { %1760 = vmatprep.subr.bf16.mxu1 %v1926_v13  ;;  %v1970_v13 = vld [vmem:[#allocation7 + $0x188] sm:$0xff]  }
  0x88   :  { %1739 = vmatpush3.bf16.msra.mxu0 %v1927_v15  ;;  %v1973_v15 = vld [vmem:[#allocation7 + $0x110] sm:$0xff]  }
  0x89   :  { %1768 = vmatprep.subr.bf16.mxu0 %v1930_v18  ;;  %1761 = vmatpush3.bf16.msra.mxu1 %v1928_v19  ;;  %v1976_v18 = vld [vmem:[#allocation7 + $0x1d8] sm:$0xff]  }
  0x8a   :  { %1790 = vmatprep.subr.bf16.mxu1 %v1931_v23  ;;  %v1977_v19 = vld [vmem:[#allocation7 + $0x118] sm:$0xff]   ;;  %v1981_v23 = vld [vmem:[#allocation7 + $0x120] sm:$0xff]  }
  0x8b   :  { %934 = vmatmul.mubr.bf16.vlgmr.msra.gmra.mrb[4].mxu0 %v177_v22  ;;  %v1980_v22 = vld [vmem:[#allocation7 + $0x1e0] sm:$0xff]  }
  0x8c   :  { %1769 = vmatpush3.bf16.msra.mxu0 %v1932_v26  ;;  %974 = vmatmul.mubr.bf16.vlgmr.msra.gmra.mrb[4].mxu1 %v179_v27  ;;  %v1984_v26 = vld [vmem:[#allocation7 + $0x1e8] sm:$0xff]  }
  0x8d   :  { %1770 = vmatprep.subr.bf16.mxu0 %v1934_v28  ;;  %1791 = vmatpush3.bf16.msra.mxu1 %v1933_v30  ;;  %v1985_v27 = vld [vmem:[#allocation7 + $0x128] sm:$0xff]   ;;  %v1987_v28 = vld [vmem:[#allocation7 + $0x170] sm:$0xff]  }
  0x8e   :  { %1792 = vmatprep.subr.bf16.mxu1 %v1935_v31  ;;  %1397 = vmatprep.mubr.bf16.mxu0 %v120_v3  ;;  %v1988_v30 = vld [vmem:[#allocation7 + $0x1f0] sm:$0xff]  }
  0x8f   :  { %1437 = vmatprep.mubr.bf16.mxu1 %v122_v8  ;;  %v1989_v31 = vld [vmem:[#allocation7 + $0x130] sm:$0xff]  }
  0x90   :  { %1771 = vmatpush3.bf16.msra.mxu0 %v1936_v32  ;;  %v1991_v32 = vld [vmem:[#allocation7 + $0x178] sm:$0xff]  }
  0x91   :  { %1772 = vmatprep.subr.bf16.mxu0 %v1938_v33  ;;  %1793 = vmatpush3.bf16.msra.mxu1 %v1937_v34  ;;  %v1990_v33 = vld [vmem:[#allocation7 + $0x1b0] sm:$0xff]   ;;  %v1992_v34 = vld [vmem:[#allocation7 + $0x1f8] sm:$0xff]  }
  0x92   :  { %1794 = vmatprep.subr.bf16.mxu1 %v1939_v36  ;;  %v1993_v36 = vld [vmem:[#allocation7 + $0x138] sm:$0xff]  }
  0x94   :  { %1773 = vmatpush3.bf16.msra.mxu0 %v1940_v37  ;;  %v74_v37 = vld [vmem:[#allocation2 + $0x8] sm:$0xff] }
  0x95   :  { %1774 = vmatprep.subr.bf16.mxu0 %v1942_v38  ;;  %1795 = vmatpush3.bf16.msra.mxu1 %v1941_v39  ;;  %v101_v38 = vrot.slane %v74_v37, %v2200_v35  ;;  %v94_v39 = vcombine.high %v74_v37, %v74_v37 }
  0x96   :  { %1796 = vmatprep.subr.bf16.mxu1 %v1943_v40  ;;  %v1994_v40 = vld [vmem:[#allocation7 + $0x1b8] sm:$0xff]  }
  0x98   :  { %1775 = vmatpush3.bf16.msra.mxu0 %v1944_v41  ;;  %v109_v41 = vcombine.high %v101_v38, %v101_v38 }
  0x99   :  { %1776 = vmatprep.subr.bf16.mxu0 %v1946_v42  ;;  %1797 = vmatpush3.bf16.msra.mxu1 %v1945_v43  ;;  %v108_v42 = vrot.slane %v94_v39, %v2200_v35  ;;  %v123_v43 = vpack.c.bf16 %v101_v38, %v101_v38 }
  0x9a   :  { %1798 = vmatprep.subr.bf16.mxu1 %v1947_v44  ;;  %v124_v44 = vpack.c.bf16 %v109_v41, %v109_v41 }
  0x9c   :  { %1777 = vmatpush3.bf16.msra.mxu0 %v1948_v45  ;;  %v110_v45 = vcombine.high %v108_v42, %v108_v42 }
  0x9d   :  { %1778 = vmatprep.subr.bf16.mxu0 %v1950_v46  ;;  %1799 = vmatpush3.bf16.msra.mxu1 %v1949_v47  ;;  %v125_v46 = vpack.c.bf16 %v108_v42, %v108_v42 }
  0x9e   :  { %1800 = vmatprep.subr.bf16.mxu1 %v1951_v48  ;;  %v126_v47 = vpack.c.bf16 %v110_v45, %v110_v45 }
  0xa0   :  { %1779 = vmatpush3.bf16.msra.mxu0 %v1952_v49 }
  0xa1   :  { %1780 = vmatprep.subr.bf16.mxu0 %v1954_v50  ;;  %1801 = vmatpush3.bf16.msra.mxu1 %v1953_v51 }
  0xa2   :  { %1802 = vmatprep.subr.bf16.mxu1 %v1955_v52 }
  0xa4   :  { %1781 = vmatpush3.bf16.msra.mxu0 %v1956_v53 }
  0xa5   :  { %1782 = vmatprep.subr.bf16.mxu0 %v1958_v54  ;;  %1803 = vmatpush3.bf16.msra.mxu1 %v1957_v55 }
  0xa6   :  { %1804 = vmatprep.subr.bf16.mxu1 %v1959_v56 }
  0xa8   :  { %1783 = vmatpush3.bf16.msra.mxu0 %v1960_v58 }
  0xa9   :  { %1812 = vmatprep.subr.bf16.mxu0 %v1963_v61  ;;  %1805 = vmatpush3.bf16.msra.mxu1 %v1961_v62 }
  0xaa   :  { %1834 = vmatprep.subr.bf16.mxu1 %v1964_v2 }
  0xab   :  { %1398 = vmatmul.mubr.bf16.vlgmr.msra.gmra.mrb[8].mxu0 %v119_v1 }
  0xac   :  { %1813 = vmatpush3.bf16.msra.mxu0 %v1965_v5  ;;  %1438 = vmatmul.mubr.bf16.vlgmr.msra.gmra.mrb[8].mxu1 %v121_v6 }
  0xad   :  { %1814 = vmatprep.subr.bf16.mxu0 %v1967_v7  ;;  %1835 = vmatpush3.bf16.msra.mxu1 %v1966_v9 }
  0xae   :  { %1836 = vmatprep.subr.bf16.mxu1 %v1968_v10  ;;  %1477 = vmatprep.mubr.bf16.mxu0 %v124_v44 }
  0xaf   :  { %1517 = vmatprep.mubr.bf16.mxu1 %v126_v47 }
  0xb0   :  { %1815 = vmatpush3.bf16.msra.mxu0 %v1969_v11 }
  0xb1   :  { %1816 = vmatprep.subr.bf16.mxu0 %v1971_v12  ;;  %1837 = vmatpush3.bf16.msra.mxu1 %v1970_v13 }
  0xb2   :  { %1838 = vmatprep.subr.bf16.mxu1 %v1972_v14 }
  0xb4   :  { %1817 = vmatpush3.bf16.msra.mxu0 %v1973_v15 }
  0xb5   :  { %1818 = vmatprep.subr.bf16.mxu0 %v1975_v16  ;;  %1839 = vmatpush3.bf16.msra.mxu1 %v1974_v17 }
  0xb6   :  { %1840 = vmatprep.subr.bf16.mxu1 %v1976_v18 }
  0xb8   :  { %1819 = vmatpush3.bf16.msra.mxu0 %v1977_v19 }
  0xb9   :  { %1820 = vmatprep.subr.bf16.mxu0 %v1979_v20  ;;  %1841 = vmatpush3.bf16.msra.mxu1 %v1978_v21 }
  0xba   :  { %1842 = vmatprep.subr.bf16.mxu1 %v1980_v22 }
  0xbc   :  { %1821 = vmatpush3.bf16.msra.mxu0 %v1981_v23 }
  0xbd   :  { %1822 = vmatprep.subr.bf16.mxu0 %v1983_v24  ;;  %1843 = vmatpush3.bf16.msra.mxu1 %v1982_v25 }
  0xbe   :  { %1844 = vmatprep.subr.bf16.mxu1 %v1984_v26 }
  0xc0   :  { %1823 = vmatpush3.bf16.msra.mxu0 %v1985_v27 }
  0xc1   :  { %1824 = vmatprep.subr.bf16.mxu0 %v1987_v28  ;;  %1845 = vmatpush3.bf16.msra.mxu1 %v1986_v29  ;;  %v1679_v29 = vld [vmem:[%s2229_s4] ss:$0 sm:$0xff] }
  0xc2   :  { %1846 = vmatprep.subr.bf16.mxu1 %v1988_v30 }
  0xc4   :  { %1825 = vmatpush3.bf16.msra.mxu0 %v1989_v31 }
  0xc5   :  { %1826 = vmatprep.subr.bf16.mxu0 %v1991_v32  ;;  %1847 = vmatpush3.bf16.msra.mxu1 %v1990_v33 }
  0xc6   :  { %1848 = vmatprep.subr.bf16.mxu1 %v1992_v34 }
  0xc8   :  { %1827 = vmatpush3.bf16.msra.mxu0 %v1993_v36 }
  0xc9   :  { %1849 = vmatpush3.bf16.msra.mxu1 %v1994_v40 }
  0xcb   :  { %1478 = vmatmul.mubr.bf16.vlgmr.msra.gmra.mrb[12].mxu0 %v123_v43 }
  0xcc   :  { %1518 = vmatmul.mubr.bf16.vlgmr.msra.gmra.mrb[12].mxu1 %v125_v46 }
 0x13e   :  { %v1696_v48 = vpop.f32.mrb[0].mxu0 }
 0x13f   :  { %v1697_v49 = vpop.f32.mrb[1].mxu0  ;;  %v1718_v50 = vpop.f32.mrb[0].mxu1 }
 0x140   :  { %v1698_v51 = vadd.f32 %v1697_v49, %v1696_v48  ;;  %v1699_v52 = vpop.f32.mrb[2].mxu0  ;;  %v1719_v53 = vpop.f32.mrb[1].mxu1 }
 0x141   :  { %v1700_v54 = vpop.f32.mrb[3].mxu0  ;;  %v1720_v55 = vadd.f32 %v1719_v53, %v1718_v50  ;;  %v1721_v35 = vpop.f32.mrb[2].mxu1 }
 0x142   :  { %v1722_v56 = vpop.f32.mrb[3].mxu1 }
 0x143   :  { %v896_v57 = vadd.f32 %v1720_v55, %v1698_v51 }
 0x15e   :  { %v1740_v58 = vpop.f32.mrb[4].mxu0 }
 0x15f   :  { %v1741_v59 = vpop.f32.mrb[5].mxu0  ;;  %v1762_v60 = vpop.f32.mrb[4].mxu1 }
 0x160   :  { %v1742_v61 = vadd.f32 %v1741_v59, %v1740_v58  ;;  %v1743_v62 = vpop.f32.mrb[6].mxu0  ;;  %v1763_v63 = vpop.f32.mrb[5].mxu1 }
 0x161   :  { %v1744_v0 = vpop.f32.mrb[7].mxu0  ;;  %v1764_v2 = vadd.f32 %v1763_v63, %v1762_v60  ;;  %v1765_v3 = vpop.f32.mrb[6].mxu1 }
 0x162   :  { %v936_v1 = vadd.f32 %v1742_v61, %v896_v57  ;;  %v1766_v4 = vpop.f32.mrb[7].mxu1 }
 0x164   :  { %v976_v5 = vadd.f32 %v1764_v2, %v936_v1 }
 0x17e   :  { %v1784_v6 = vpop.f32.mrb[8].mxu0 }
 0x17f   :  { %v1785_v7 = vpop.f32.mrb[9].mxu0  ;;  %v1806_v8 = vpop.f32.mrb[8].mxu1 }
 0x180   :  { %v1786_v9 = vadd.f32 %v1785_v7, %v1784_v6  ;;  %v1787_v10 = vpop.f32.mrb[10].mxu0  ;;  %v1807_v11 = vpop.f32.mrb[9].mxu1 }
 0x181   :  { %v1788_v12 = vpop.f32.mrb[11].mxu0  ;;  %v1808_v14 = vadd.f32 %v1807_v11, %v1806_v8  ;;  %v1809_v15 = vpop.f32.mrb[10].mxu1 }
 0x182   :  { %v1400_v13 = vadd.f32 %v1786_v9, %v976_v5  ;;  %v1810_v16 = vpop.f32.mrb[11].mxu1 }
 0x184   :  { %v1440_v17 = vadd.f32 %v1808_v14, %v1400_v13 }
 0x19e   :  { %v1828_v18 = vpop.f32.mrb[12].mxu0 }
 0x19f   :  { %v1829_v19 = vpop.f32.mrb[13].mxu0  ;;  %v1850_v20 = vpop.f32.mrb[12].mxu1 }
 0x1a0   :  { %v1830_v21 = vadd.f32 %v1829_v19, %v1828_v18  ;;  %v1831_v22 = vpop.f32.mrb[14].mxu0  ;;  %v1851_v23 = vpop.f32.mrb[13].mxu1 }
 0x1a1   :  { %v1832_v24 = vpop.f32.mrb[15].mxu0  ;;  %v1852_v26 = vadd.f32 %v1851_v23, %v1850_v20  ;;  %v1853_v27 = vpop.f32.mrb[14].mxu1 }
 0x1a2   :  { %v1480_v25 = vadd.f32 %v1830_v21, %v1440_v17  ;;  %v1854_v28 = vpop.f32.mrb[15].mxu1 }
 0x1a4   :  { %v1520_v30 = vadd.f32 %v1852_v26, %v1480_v25 }
 0x1a6   :  { %v1532_v31 = vadd.f32 %v1679_v29, %v1520_v30 }
 0x1a8   :  { %1533 = vst [vmem:[#allocation10] sm:$0x3] %v1532_v31 }
 0x1a9   :  { %2095 = shalt.err (!%p2092_p8)
}
 0x1aa   :  { %s2096_s20 = scalar_lea.hbm %s2230_s5, 32 }
 0x1ab   :  { %p2097_p9 = scmp.ne.s32.totalorder %s2230_s5, %s2096_s20  ;;  %p2100_p10 = scmp.lt.u32.totalorder %s2096_s20, %s2230_s5 }
 0x1ad   :  { %p2102_p11 = pnand %p2100_p10, %p2097_p9 }
 0x1af   :  { %2105 = shalt.err (!%p2102_p11)
}
 0x1b0   :  { %1543 = dma.vmem_to_hbm [thread:$0]  %s1541_s16, 32, %s2230_s5, [#allocation4]  }
 0x1b1   :  { %2112 = dma.done.wait [#allocation4], 32  }
 0x1b2   :  { %2113 = vsyncadd [#allocation4], 4294967264 }
 0x1b3   :  { %1547 = vsyncpa [#allocation3], 1 }
 0x1b4   :  { %1548 = vsyncpa [#allocation6], 1 }
 0x1b5   :  { %1549 = vsyncpa [#allocation9], 1 }
 0x1b6   :  { %1550 = vsyncpa [#allocation4], 1 }

</bundles_post_ra>
